<compile_context>
chip_gen: v7x
topology: tpu7x:2x2x1
jax: 0.10.0
libtpu: 0.0.40
codegen_flags: <defaults>
</compile_context>

<pallas_src>
import math
import functools

import jax
import jax.numpy as jnp
from jax.experimental import pallas as pl
from jax.experimental.pallas import tpu as pltpu

# Small, module-consistent config (dim divisible by n_heads, head_dim even for RoPE).
DIM = 64
N_HEADS = 4
HEAD_DIM = DIM // N_HEADS


def _attn_kernel(x_ref, wbig_ref, bbig_ref, wproj_ref, bproj_ref,
                 cos_ref, sin_ref, *rest, B, T, C, H, HD, has_mask):
    if has_mask:
        mask_ref, o_ref = rest
    else:
        (o_ref,) = rest

    # Fused projection: [ q*scale | k | v | rotate_half(q)*scale | rotate_half(k) ] -> (B*T, 5C) f32.
    qkv = jnp.dot(x_ref[...], wbig_ref[...],
                  preferred_element_type=jnp.float32) + bbig_ref[...]

    # Rotary tables arrive as (T, C); tile across batch in-kernel (sublane copies only).
    cos = jnp.concatenate([cos_ref[...]] * B, axis=0)          # (B*T, C)
    sin = jnp.concatenate([sin_ref[...]] * B, axis=0)

    # RoPE on full lane-dense slabs (rotate_half + 1/sqrt(HD) already folded into the weights).
    q = (qkv[:, 0 * C:1 * C] * cos + qkv[:, 3 * C:4 * C] * sin).astype(jnp.bfloat16)
    k = (qkv[:, 1 * C:2 * C] * cos + qkv[:, 4 * C:5 * C] * sin).astype(jnp.bfloat16)
    v = qkv[:, 2 * C:3 * C].astype(jnp.bfloat16)

    nt = (((1,), (1,)), ((), ()))   # contract last dims   (rhs transposed)
    tn = (((0,), (0,)), ((), ()))   # contract first dims  (lhs transposed)

    # Per-head scores in KEY-major layout, lane-packed across all B*H heads:
    #   s[kk, bh*T + qq] = k_kk . q_qq  (already scaled via the folded weights).
    tiles = []
    for b in range(B):                                   # static, fully unrolled (B*H tiny)
        r0, r1 = b * T, (b + 1) * T
        for h in range(H):
            c0, c1 = h * HD, (h + 1) * HD
            tiles.append(jax.lax.dot_general(k[r0:r1, c0:c1], q[r0:r1, c0:c1], nt,
                                             preferred_element_type=jnp.float32))
    s = jnp.concatenate(tiles, axis=1)                   # (T, B*H*T) f32

    if has_mask:
        s = s + mask_ref[...]                            # pre-packed (T, B*H*T) additive mask

    # Batched softmax over keys (sublane axis): ONE max/exp/sum/reciprocal chain for all heads.
    s = s - jnp.max(s, axis=0, keepdims=True)
    e = jnp.exp(s)
    p = (e * pl.reciprocal(jnp.sum(e, axis=0, keepdims=True), approx=True)).astype(jnp.bfloat16)
    # TODO(synk): dropout on attn_probs is a no-op in eval mode; not implemented.

    # Per-head PV matmuls, assembled into one (B*T, C) slab; single merged output projection.
    row_blocks = []
    for b in range(B):
        r0, r1 = b * T, (b + 1) * T
        col_blocks = []
        for h in range(H):
            bh = b * H + h
            c0, c1 = h * HD, (h + 1) * HD
            p_h = p[:, bh * T:(bh + 1) * T]              # (T_k, T_q) bf16
            oh = jax.lax.dot_general(p_h, v[r0:r1, c0:c1], tn,
                                     preferred_element_type=jnp.float32)   # (T_q, HD)
            col_blocks.append(oh)
        row_blocks.append(jnp.concatenate(col_blocks, axis=1))             # (T, C)
    attn = jnp.concatenate(row_blocks, axis=0).astype(jnp.bfloat16)        # (B*T, C)

    out = jnp.dot(attn, wproj_ref[...],
                  preferred_element_type=jnp.float32) + bproj_ref[...]      # (B*T, C)
    o_ref[...] = out.astype(o_ref.dtype)                 # one store; wrapper reshape only


def _rotate_half_cols(w, n_heads, head_dim):
    """Permute+negate the last axis (size n_heads*head_dim) so that
       x @ rotate_half_cols(W) == rotate_half(x @ W), applied per head."""
    shp = w.shape
    wr = w.reshape(shp[:-1] + (n_heads, 2, head_dim // 2))
    w1 = wr[..., 0, :]
    w2 = wr[..., 1, :]
    return jnp.stack([-w2, w1], axis=-2).reshape(shp)


@jax.jit
def hrom_attention_pallas(x, wqkv, bqkv, wproj, bproj, mask=None):
    """x: (B, T, C) float32.  wqkv: (3C, C), bqkv: (3C,), wproj: (C, C), bproj: (C,)
       in PyTorch nn.Linear layout.  mask: optional (T, T) or (B, T, T) additive float mask."""
    B, T, C = x.shape
    H, HD = N_HEADS, C // N_HEADS
    scale = 1.0 / math.sqrt(HD)

    # ---- wrapper-side layout plumbing (tiny, one-time per call) ----
    wq_t = wqkv[:C].T * scale                            # fold 1/sqrt(HD) into q columns
    wk_t = wqkv[C:2 * C].T
    wv_t = wqkv[2 * C:].T
    bq = bqkv[:C] * scale
    bk, bv = bqkv[C:2 * C], bqkv[2 * C:]

    # Fused weight also emits pre-rotated q/k so the kernel never lane-shuffles for RoPE.
    wbig = jnp.concatenate(
        [wq_t, wk_t, wv_t,
         _rotate_half_cols(wq_t, H, HD), _rotate_half_cols(wk_t, H, HD)],
        axis=1).astype(jnp.bfloat16)                     # (C, 5C)
    bbig = jnp.concatenate(
        [bq, bk, bv,
         _rotate_half_cols(bq, H, HD), _rotate_half_cols(bk, H, HD)]
    ).astype(jnp.float32).reshape(1, 5 * C)

    # Rotary tables, tiled across heads only -> (T, C); batch tiling happens in-kernel.
    inv_freq = 1.0 / (10000.0 ** (jnp.arange(0, HD, 2, dtype=jnp.float32) / HD))
    t = jnp.arange(T, dtype=jnp.float32)
    freqs = jnp.einsum('i,j->ij', t, inv_freq)           # (T, HD/2)
    pos = jnp.concatenate([freqs, freqs], axis=-1)       # (T, HD)
    cos_tc = jnp.tile(jnp.cos(pos), (1, H))              # (T, C)
    sin_tc = jnp.tile(jnp.sin(pos), (1, H))

    x2d = x.reshape(B * T, C).astype(jnp.bfloat16)
    wproj_t = wproj.T.astype(jnp.bfloat16)               # (C, C)
    bproj2 = bproj.astype(jnp.float32).reshape(1, C)

    has_mask = mask is not None
    inputs = [x2d, wbig, bbig, wproj_t, bproj2, cos_tc, sin_tc]
    if has_mask:
        m = mask.astype(jnp.float32)
        # Pre-pack the additive mask into the KEY-major packed score layout (T, B*H*T):
        # packed[kk, (b*H+h)*T + qq] = mask[qq, kk]  (or mask[b, qq, kk] for 3-D masks).
        if m.ndim == 2:
            m_packed = jnp.tile(m.T, (1, B * H))
        elif m.ndim == 3:
            m_packed = jnp.concatenate([jnp.tile(m[b].T, (1, H)) for b in range(B)], axis=1)
        else:
            raise ValueError("mask must be 2-D (T,T) or 3-D (B,T,T)")
        inputs.append(m_packed)

    kernel = functools.partial(_attn_kernel, B=B, T=T, C=C, H=H, HD=HD, has_mask=has_mask)

    flops = (2 * (B * T) * C * (5 * C)       # fused qkv(+rot) projection
             + 4 * B * H * T * T * HD        # qk^T and pv
             + 2 * (B * T) * C * C)          # merged output projection
    bytes_accessed = sum(int(a.size) * a.dtype.itemsize for a in inputs) + (B * T) * C * 4

    # Single invocation (no grid): at these toy sizes per-step pipeline overhead dominates,
    # so everything lives in VMEM and runs in one step. For large T / B, switch to a
    # flash-style grid over (B*H "parallel") x (kv-tiles "arbitrary") — on v7x also re-derive
    # the VMEM cutoff (64 MiB) and mark a B*H axis "parallel" to use both TensorCores.
    out2d = pl.pallas_call(
        kernel,
        out_shape=jax.ShapeDtypeStruct((B * T, C), jnp.float32),
        in_specs=[pl.BlockSpec(memory_space=pltpu.MemorySpace.VMEM) for _ in inputs],
        out_specs=pl.BlockSpec(memory_space=pltpu.MemorySpace.VMEM),
        cost_estimate=pl.CostEstimate(flops=flops,
                                      transcendentals=B * H * T * T,
                                      bytes_accessed=bytes_accessed),
    )(*inputs)

    return out2d.reshape(B, T, C).astype(x.dtype)


def hrom_attention_ref(x, wqkv, bqkv, wproj, bproj, mask=None):
    """Pure-JAX (f32) reference mirroring the PyTorch forward (eval mode)."""
    B, T, C = x.shape
    H, HD = N_HEADS, C // N_HEADS
    qkv = x @ wqkv.T + bqkv                              # (B, T, 3C)
    qkv = qkv.reshape(B, T, 3, H, HD)
    q, k, v = qkv[:, :, 0], qkv[:, :, 1], qkv[:, :, 2]   # (B, T, H, HD)
    q = jnp.transpose(q, (0, 2, 1, 3))                   # (B, H, T, HD)
    k = jnp.transpose(k, (0, 2, 1, 3))
    v = jnp.transpose(v, (0, 2, 1, 3))

    inv_freq = 1.0 / (10000.0 ** (jnp.arange(0, HD, 2, dtype=jnp.float32) / HD))
    t = jnp.arange(T, dtype=jnp.float32)
    freqs = jnp.einsum('i,j->ij', t, inv_freq)
    pos = jnp.concatenate([freqs, freqs], axis=-1)[None, None]   # (1,1,T,HD)

    def rotate_half(a):
        a1, a2 = jnp.split(a, 2, axis=-1)
        return jnp.concatenate([-a2, a1], axis=-1)

    q = q * jnp.cos(pos) + rotate_half(q) * jnp.sin(pos)
    k = k * jnp.cos(pos) + rotate_half(k) * jnp.sin(pos)

    scores = (q @ jnp.swapaxes(k, -2, -1)) * (1.0 / math.sqrt(HD))
    if mask is not None:
        scores = scores + (mask[None, None] if mask.ndim == 2 else mask[:, None])
    probs = jax.nn.softmax(scores.astype(jnp.float32), axis=-1).astype(x.dtype)
    out = probs @ v                                      # (B, H, T, HD)
    out = jnp.transpose(out, (0, 2, 1, 3)).reshape(B, T, C)
    return out @ wproj.T + bproj


if __name__ == "__main__":
    B, T, C = 2, 8, DIM

    key = jax.random.PRNGKey(0)
    kx, k1, k2, k3, k4 = jax.random.split(key, 5)

    x = jax.random.normal(kx, (B, T, C), dtype=jnp.float32)
    bound = 1.0 / math.sqrt(C)
    wqkv = jax.random.uniform(k1, (3 * C, C), minval=-bound, maxval=bound, dtype=jnp.float32)
    bqkv = jax.random.uniform(k2, (3 * C,), minval=-bound, maxval=bound, dtype=jnp.float32)
    wproj = jax.random.uniform(k3, (C, C), minval=-bound, maxval=bound, dtype=jnp.float32)
    bproj = jax.random.uniform(k4, (C,), minval=-bound, maxval=bound, dtype=jnp.float32)

    # No-mask path (mask=None -> no mask array is ever built or DMA'd).
    out = jax.block_until_ready(hrom_attention_pallas(x, wqkv, bqkv, wproj, bproj, mask=None))
    ref = hrom_attention_ref(x, wqkv, bqkv, wproj, bproj, mask=None)
    assert out.shape == (B, T, C)
    # bf16 MXU operands with f32 accumulation -> bf16-appropriate tolerance vs f32 reference.
    assert jnp.allclose(out, ref, atol=2e-2, rtol=2e-2), "Pallas output mismatch (no mask)"

    # Causal 2-D additive-mask path.
    causal = jnp.where(jnp.tril(jnp.ones((T, T), dtype=bool)), 0.0, -1e9).astype(jnp.float32)
    out_m = jax.block_until_ready(hrom_attention_pallas(x, wqkv, bqkv, wproj, bproj, mask=causal))
    ref_m = hrom_attention_ref(x, wqkv, bqkv, wproj, bproj, mask=causal)
    assert jnp.allclose(out_m, ref_m, atol=2e-2, rtol=2e-2), "Pallas output mismatch (2-D mask)"

    # Per-batch 3-D additive-mask path (padding-style mask on batch 1).
    pad = jnp.zeros((B, T, T), jnp.float32).at[1, :, T - 2:].set(-1e9)
    out_p = jax.block_until_ready(hrom_attention_pallas(x, wqkv, bqkv, wproj, bproj, mask=pad))
    ref_p = hrom_attention_ref(x, wqkv, bqkv, wproj, bproj, mask=pad)
    assert jnp.allclose(out_p, ref_p, atol=2e-2, rtol=2e-2), "Pallas output mismatch (3-D mask)"

    print("KERNEL_OK")
</pallas_src>

<mosaic_0001>
module attributes {stable_mosaic.version = 11 : i64} {
  func.func @_attn_kernel(%arg0: memref<16x64xbf16, #tpu.memory_space<vmem>>, %arg1: memref<64x320xbf16, #tpu.memory_space<vmem>>, %arg2: memref<1x320xf32, #tpu.memory_space<vmem>>, %arg3: memref<64x64xbf16, #tpu.memory_space<vmem>>, %arg4: memref<1x64xf32, #tpu.memory_space<vmem>>, %arg5: memref<8x64xf32, #tpu.memory_space<vmem>>, %arg6: memref<8x64xf32, #tpu.memory_space<vmem>>, %arg7: memref<16x64xf32, #tpu.memory_space<vmem>>) attributes {dimension_semantics = [], scalar_prefetch = 0 : i64, scratch_operands = 0 : i64, tpu.core_type = #tpu.core_type<tc>} {
    %c0 = arith.constant 0 : index
    %c0_0 = arith.constant 0 : index
    %0 = vector.load %arg0[%c0, %c0_0] : memref<16x64xbf16, #tpu.memory_space<vmem>>, vector<16x64xbf16>
    %c0_1 = arith.constant 0 : index
    %c0_2 = arith.constant 0 : index
    %1 = vector.load %arg1[%c0_1, %c0_2] : memref<64x320xbf16, #tpu.memory_space<vmem>>, vector<64x320xbf16>
    %cst = arith.constant dense<0.000000e+00> : vector<16x320xf32>
    %2 = tpu.matmul %0, %1, %cst {dimension_numbers = #tpu.dot_dimension_numbers<[1], [0], [0], [1], [0, 0, 1, 1], [], []>} : vector<16x64xbf16>, vector<64x320xbf16>, vector<16x320xf32> -> vector<16x320xf32>
    %c0_3 = arith.constant 0 : index
    %c0_4 = arith.constant 0 : index
    %3 = vector.load %arg2[%c0_3, %c0_4] : memref<1x320xf32, #tpu.memory_space<vmem>>, vector<1x320xf32>
    %4 = vector.broadcast %3 : vector<1x320xf32> to vector<16x320xf32>
    %5 = arith.addf %2, %4 : vector<16x320xf32>
    %c0_5 = arith.constant 0 : index
    %c0_6 = arith.constant 0 : index
    %6 = vector.load %arg5[%c0_5, %c0_6] : memref<8x64xf32, #tpu.memory_space<vmem>>, vector<8x64xf32>
    %7 = tpu.concatenate %6, %6 in 0 : vector<8x64xf32>, vector<8x64xf32> -> vector<16x64xf32>
    %c0_7 = arith.constant 0 : index
    %c0_8 = arith.constant 0 : index
    %8 = vector.load %arg6[%c0_7, %c0_8] : memref<8x64xf32, #tpu.memory_space<vmem>>, vector<8x64xf32>
    %9 = tpu.concatenate %8, %8 in 0 : vector<8x64xf32>, vector<8x64xf32> -> vector<16x64xf32>
    %10 = vector.extract_strided_slice %5 {offsets = [0, 0], sizes = [16, 64], strides = [1, 1]} : vector<16x320xf32> to vector<16x64xf32>
    %11 = arith.mulf %10, %7 : vector<16x64xf32>
    %12 = vector.extract_strided_slice %5 {offsets = [0, 192], sizes = [16, 64], strides = [1, 1]} : vector<16x320xf32> to vector<16x64xf32>
    %13 = arith.mulf %12, %9 : vector<16x64xf32>
    %14 = arith.addf %11, %13 : vector<16x64xf32>
    %15 = arith.truncf %14 : vector<16x64xf32> to vector<16x64xbf16>
    %16 = vector.extract_strided_slice %5 {offsets = [0, 64], sizes = [16, 64], strides = [1, 1]} : vector<16x320xf32> to vector<16x64xf32>
    %17 = arith.mulf %16, %7 : vector<16x64xf32>
    %18 = vector.extract_strided_slice %5 {offsets = [0, 256], sizes = [16, 64], strides = [1, 1]} : vector<16x320xf32> to vector<16x64xf32>
    %19 = arith.mulf %18, %9 : vector<16x64xf32>
    %20 = arith.addf %17, %19 : vector<16x64xf32>
    %21 = arith.truncf %20 : vector<16x64xf32> to vector<16x64xbf16>
    %22 = vector.extract_strided_slice %5 {offsets = [0, 128], sizes = [16, 64], strides = [1, 1]} : vector<16x320xf32> to vector<16x64xf32>
    %23 = arith.truncf %22 : vector<16x64xf32> to vector<16x64xbf16>
    %24 = vector.extract_strided_slice %21 {offsets = [0, 0], sizes = [8, 16], strides = [1, 1]} : vector<16x64xbf16> to vector<8x16xbf16>
    %25 = vector.extract_strided_slice %15 {offsets = [0, 0], sizes = [8, 16], strides = [1, 1]} : vector<16x64xbf16> to vector<8x16xbf16>
    %cst_9 = arith.constant dense<0.000000e+00> : vector<8x8xf32>
    %26 = tpu.matmul %24, %25, %cst_9 {dimension_numbers = #tpu.dot_dimension_numbers<[1], [1], [0], [0], [0, 0, 1, 0], [], []>} : vector<8x16xbf16>, vector<8x16xbf16>, vector<8x8xf32> -> vector<8x8xf32>
    %27 = vector.extract_strided_slice %21 {offsets = [0, 16], sizes = [8, 16], strides = [1, 1]} : vector<16x64xbf16> to vector<8x16xbf16>
    %28 = vector.extract_strided_slice %15 {offsets = [0, 16], sizes = [8, 16], strides = [1, 1]} : vector<16x64xbf16> to vector<8x16xbf16>
    %cst_10 = arith.constant dense<0.000000e+00> : vector<8x8xf32>
    %29 = tpu.matmul %27, %28, %cst_10 {dimension_numbers = #tpu.dot_dimension_numbers<[1], [1], [0], [0], [0, 0, 1, 0], [], []>} : vector<8x16xbf16>, vector<8x16xbf16>, vector<8x8xf32> -> vector<8x8xf32>
    %30 = vector.extract_strided_slice %21 {offsets = [0, 32], sizes = [8, 16], strides = [1, 1]} : vector<16x64xbf16> to vector<8x16xbf16>
    %31 = vector.extract_strided_slice %15 {offsets = [0, 32], sizes = [8, 16], strides = [1, 1]} : vector<16x64xbf16> to vector<8x16xbf16>
    %cst_11 = arith.constant dense<0.000000e+00> : vector<8x8xf32>
    %32 = tpu.matmul %30, %31, %cst_11 {dimension_numbers = #tpu.dot_dimension_numbers<[1], [1], [0], [0], [0, 0, 1, 0], [], []>} : vector<8x16xbf16>, vector<8x16xbf16>, vector<8x8xf32> -> vector<8x8xf32>
    %33 = vector.extract_strided_slice %21 {offsets = [0, 48], sizes = [8, 16], strides = [1, 1]} : vector<16x64xbf16> to vector<8x16xbf16>
    %34 = vector.extract_strided_slice %15 {offsets = [0, 48], sizes = [8, 16], strides = [1, 1]} : vector<16x64xbf16> to vector<8x16xbf16>
    %cst_12 = arith.constant dense<0.000000e+00> : vector<8x8xf32>
    %35 = tpu.matmul %33, %34, %cst_12 {dimension_numbers = #tpu.dot_dimension_numbers<[1], [1], [0], [0], [0, 0, 1, 0], [], []>} : vector<8x16xbf16>, vector<8x16xbf16>, vector<8x8xf32> -> vector<8x8xf32>
    %36 = vector.extract_strided_slice %21 {offsets = [8, 0], sizes = [8, 16], strides = [1, 1]} : vector<16x64xbf16> to vector<8x16xbf16>
    %37 = vector.extract_strided_slice %15 {offsets = [8, 0], sizes = [8, 16], strides = [1, 1]} : vector<16x64xbf16> to vector<8x16xbf16>
    %cst_13 = arith.constant dense<0.000000e+00> : vector<8x8xf32>
    %38 = tpu.matmul %36, %37, %cst_13 {dimension_numbers = #tpu.dot_dimension_numbers<[1], [1], [0], [0], [0, 0, 1, 0], [], []>} : vector<8x16xbf16>, vector<8x16xbf16>, vector<8x8xf32> -> vector<8x8xf32>
    %39 = vector.extract_strided_slice %21 {offsets = [8, 16], sizes = [8, 16], strides = [1, 1]} : vector<16x64xbf16> to vector<8x16xbf16>
    %40 = vector.extract_strided_slice %15 {offsets = [8, 16], sizes = [8, 16], strides = [1, 1]} : vector<16x64xbf16> to vector<8x16xbf16>
    %cst_14 = arith.constant dense<0.000000e+00> : vector<8x8xf32>
    %41 = tpu.matmul %39, %40, %cst_14 {dimension_numbers = #tpu.dot_dimension_numbers<[1], [1], [0], [0], [0, 0, 1, 0], [], []>} : vector<8x16xbf16>, vector<8x16xbf16>, vector<8x8xf32> -> vector<8x8xf32>
    %42 = vector.extract_strided_slice %21 {offsets = [8, 32], sizes = [8, 16], strides = [1, 1]} : vector<16x64xbf16> to vector<8x16xbf16>
    %43 = vector.extract_strided_slice %15 {offsets = [8, 32], sizes = [8, 16], strides = [1, 1]} : vector<16x64xbf16> to vector<8x16xbf16>
    %cst_15 = arith.constant dense<0.000000e+00> : vector<8x8xf32>
    %44 = tpu.matmul %42, %43, %cst_15 {dimension_numbers = #tpu.dot_dimension_numbers<[1], [1], [0], [0], [0, 0, 1, 0], [], []>} : vector<8x16xbf16>, vector<8x16xbf16>, vector<8x8xf32> -> vector<8x8xf32>
    %45 = vector.extract_strided_slice %21 {offsets = [8, 48], sizes = [8, 16], strides = [1, 1]} : vector<16x64xbf16> to vector<8x16xbf16>
    %46 = vector.extract_strided_slice %15 {offsets = [8, 48], sizes = [8, 16], strides = [1, 1]} : vector<16x64xbf16> to vector<8x16xbf16>
    %cst_16 = arith.constant dense<0.000000e+00> : vector<8x8xf32>
    %47 = tpu.matmul %45, %46, %cst_16 {dimension_numbers = #tpu.dot_dimension_numbers<[1], [1], [0], [0], [0, 0, 1, 0], [], []>} : vector<8x16xbf16>, vector<8x16xbf16>, vector<8x8xf32> -> vector<8x8xf32>
    %48 = tpu.concatenate %26, %29, %32, %35, %38, %41, %44, %47 in 1 : vector<8x8xf32>, vector<8x8xf32>, vector<8x8xf32>, vector<8x8xf32>, vector<8x8xf32>, vector<8x8xf32>, vector<8x8xf32>, vector<8x8xf32> -> vector<8x64xf32>
    %cst_17 = arith.constant dense<0xFF800000> : vector<64xf32>
    %49 = vector.multi_reduction <maximumf>, %48, %cst_17 [0] : vector<8x64xf32> to vector<64xf32>
    %50 = vector.shape_cast %49 : vector<64xf32> to vector<1x64xf32>
    %51 = vector.broadcast %50 : vector<1x64xf32> to vector<8x64xf32>
    %52 = arith.subf %48, %51 : vector<8x64xf32>
    %53 = math.exp %52 : vector<8x64xf32>
    %cst_18 = arith.constant dense<0.000000e+00> : vector<64xf32>
    %54 = vector.multi_reduction <add>, %53, %cst_18 [0] : vector<8x64xf32> to vector<64xf32>
    %55 = vector.shape_cast %54 : vector<64xf32> to vector<1x64xf32>
    %56 = tpu.reciprocal %55 {approx = true} : vector<1x64xf32> -> vector<1x64xf32>
    %57 = vector.broadcast %56 : vector<1x64xf32> to vector<8x64xf32>
    %58 = arith.mulf %53, %57 : vector<8x64xf32>
    %59 = arith.truncf %58 : vector<8x64xf32> to vector<8x64xbf16>
    %60 = vector.extract_strided_slice %59 {offsets = [0, 0], sizes = [8, 8], strides = [1, 1]} : vector<8x64xbf16> to vector<8x8xbf16>
    %61 = vector.extract_strided_slice %23 {offsets = [0, 0], sizes = [8, 16], strides = [1, 1]} : vector<16x64xbf16> to vector<8x16xbf16>
    %cst_19 = arith.constant dense<0.000000e+00> : vector<8x16xf32>
    %62 = tpu.matmul %60, %61, %cst_19 {dimension_numbers = #tpu.dot_dimension_numbers<[0], [0], [1], [1], [0, 1, 1, 1], [], []>} : vector<8x8xbf16>, vector<8x16xbf16>, vector<8x16xf32> -> vector<8x16xf32>
    %63 = vector.extract_strided_slice %59 {offsets = [0, 8], sizes = [8, 8], strides = [1, 1]} : vector<8x64xbf16> to vector<8x8xbf16>
    %64 = vector.extract_strided_slice %23 {offsets = [0, 16], sizes = [8, 16], strides = [1, 1]} : vector<16x64xbf16> to vector<8x16xbf16>
    %cst_20 = arith.constant dense<0.000000e+00> : vector<8x16xf32>
    %65 = tpu.matmul %63, %64, %cst_20 {dimension_numbers = #tpu.dot_dimension_numbers<[0], [0], [1], [1], [0, 1, 1, 1], [], []>} : vector<8x8xbf16>, vector<8x16xbf16>, vector<8x16xf32> -> vector<8x16xf32>
    %66 = vector.extract_strided_slice %59 {offsets = [0, 16], sizes = [8, 8], strides = [1, 1]} : vector<8x64xbf16> to vector<8x8xbf16>
    %67 = vector.extract_strided_slice %23 {offsets = [0, 32], sizes = [8, 16], strides = [1, 1]} : vector<16x64xbf16> to vector<8x16xbf16>
    %cst_21 = arith.constant dense<0.000000e+00> : vector<8x16xf32>
    %68 = tpu.matmul %66, %67, %cst_21 {dimension_numbers = #tpu.dot_dimension_numbers<[0], [0], [1], [1], [0, 1, 1, 1], [], []>} : vector<8x8xbf16>, vector<8x16xbf16>, vector<8x16xf32> -> vector<8x16xf32>
    %69 = vector.extract_strided_slice %59 {offsets = [0, 24], sizes = [8, 8], strides = [1, 1]} : vector<8x64xbf16> to vector<8x8xbf16>
    %70 = vector.extract_strided_slice %23 {offsets = [0, 48], sizes = [8, 16], strides = [1, 1]} : vector<16x64xbf16> to vector<8x16xbf16>
    %cst_22 = arith.constant dense<0.000000e+00> : vector<8x16xf32>
    %71 = tpu.matmul %69, %70, %cst_22 {dimension_numbers = #tpu.dot_dimension_numbers<[0], [0], [1], [1], [0, 1, 1, 1], [], []>} : vector<8x8xbf16>, vector<8x16xbf16>, vector<8x16xf32> -> vector<8x16xf32>
    %72 = tpu.concatenate %62, %65, %68, %71 in 1 : vector<8x16xf32>, vector<8x16xf32>, vector<8x16xf32>, vector<8x16xf32> -> vector<8x64xf32>
    %73 = vector.extract_strided_slice %59 {offsets = [0, 32], sizes = [8, 8], strides = [1, 1]} : vector<8x64xbf16> to vector<8x8xbf16>
    %74 = vector.extract_strided_slice %23 {offsets = [8, 0], sizes = [8, 16], strides = [1, 1]} : vector<16x64xbf16> to vector<8x16xbf16>
    %cst_23 = arith.constant dense<0.000000e+00> : vector<8x16xf32>
    %75 = tpu.matmul %73, %74, %cst_23 {dimension_numbers = #tpu.dot_dimension_numbers<[0], [0], [1], [1], [0, 1, 1, 1], [], []>} : vector<8x8xbf16>, vector<8x16xbf16>, vector<8x16xf32> -> vector<8x16xf32>
    %76 = vector.extract_strided_slice %59 {offsets = [0, 40], sizes = [8, 8], strides = [1, 1]} : vector<8x64xbf16> to vector<8x8xbf16>
    %77 = vector.extract_strided_slice %23 {offsets = [8, 16], sizes = [8, 16], strides = [1, 1]} : vector<16x64xbf16> to vector<8x16xbf16>
    %cst_24 = arith.constant dense<0.000000e+00> : vector<8x16xf32>
    %78 = tpu.matmul %76, %77, %cst_24 {dimension_numbers = #tpu.dot_dimension_numbers<[0], [0], [1], [1], [0, 1, 1, 1], [], []>} : vector<8x8xbf16>, vector<8x16xbf16>, vector<8x16xf32> -> vector<8x16xf32>
    %79 = vector.extract_strided_slice %59 {offsets = [0, 48], sizes = [8, 8], strides = [1, 1]} : vector<8x64xbf16> to vector<8x8xbf16>
    %80 = vector.extract_strided_slice %23 {offsets = [8, 32], sizes = [8, 16], strides = [1, 1]} : vector<16x64xbf16> to vector<8x16xbf16>
    %cst_25 = arith.constant dense<0.000000e+00> : vector<8x16xf32>
    %81 = tpu.matmul %79, %80, %cst_25 {dimension_numbers = #tpu.dot_dimension_numbers<[0], [0], [1], [1], [0, 1, 1, 1], [], []>} : vector<8x8xbf16>, vector<8x16xbf16>, vector<8x16xf32> -> vector<8x16xf32>
    %82 = vector.extract_strided_slice %59 {offsets = [0, 56], sizes = [8, 8], strides = [1, 1]} : vector<8x64xbf16> to vector<8x8xbf16>
    %83 = vector.extract_strided_slice %23 {offsets = [8, 48], sizes = [8, 16], strides = [1, 1]} : vector<16x64xbf16> to vector<8x16xbf16>
    %cst_26 = arith.constant dense<0.000000e+00> : vector<8x16xf32>
    %84 = tpu.matmul %82, %83, %cst_26 {dimension_numbers = #tpu.dot_dimension_numbers<[0], [0], [1], [1], [0, 1, 1, 1], [], []>} : vector<8x8xbf16>, vector<8x16xbf16>, vector<8x16xf32> -> vector<8x16xf32>
    %85 = tpu.concatenate %75, %78, %81, %84 in 1 : vector<8x16xf32>, vector<8x16xf32>, vector<8x16xf32>, vector<8x16xf32> -> vector<8x64xf32>
    %86 = tpu.concatenate %72, %85 in 0 : vector<8x64xf32>, vector<8x64xf32> -> vector<16x64xf32>
    %87 = arith.truncf %86 : vector<16x64xf32> to vector<16x64xbf16>
    %c0_27 = arith.constant 0 : index
    %c0_28 = arith.constant 0 : index
    %88 = vector.load %arg3[%c0_27, %c0_28] : memref<64x64xbf16, #tpu.memory_space<vmem>>, vector<64x64xbf16>
    %cst_29 = arith.constant dense<0.000000e+00> : vector<16x64xf32>
    %89 = tpu.matmul %87, %88, %cst_29 {dimension_numbers = #tpu.dot_dimension_numbers<[1], [0], [0], [1], [0, 0, 1, 1], [], []>} : vector<16x64xbf16>, vector<64x64xbf16>, vector<16x64xf32> -> vector<16x64xf32>
    %c0_30 = arith.constant 0 : index
    %c0_31 = arith.constant 0 : index
    %90 = vector.load %arg4[%c0_30, %c0_31] : memref<1x64xf32, #tpu.memory_space<vmem>>, vector<1x64xf32>
    %91 = vector.broadcast %90 : vector<1x64xf32> to vector<16x64xf32>
    %92 = arith.addf %89, %91 : vector<16x64xf32>
    %c0_32 = arith.constant 0 : index
    %c0_33 = arith.constant 0 : index
    %93 = vector.load %arg7[%c0_32, %c0_33] : memref<16x64xf32, #tpu.memory_space<vmem>>, vector<16x64xf32>
    tpu.vector_store %arg7[%c0_32, %c0_33], %92 {strides = array<i32>} : memref<16x64xf32, #tpu.memory_space<vmem>>, vector<16x64xf32>,
    return
  }
}

</mosaic_0001>

<bundles_post_ra>
// kernel: tile.14
= control target key start
LH: loop header
LB: loop body
LE: loop exit
PB: predicated region body
PF: predicated region fallthrough
CT: control target
= control target key end

     0   :  { %vm42_vm0 = vcmask 1047556   ;;  %vm44_vm1 = vcmask 130048   ;;  %s93_s22 = smov 16   ;;  %s94_s25 = smov 32   ;;  %vm54_vm2 = vcmask 523648   ;;  %vm64_vm3 = vcmask 392448   ;;  %s146_s0 = inlined_call_operand.vmem [shape: f32[8,4,16], index: 0, kind: input, shape index: {}]   ;;  %s147_s1 = inlined_call_operand.vmem [shape: f32[8,64], index: 1, kind: output, shape index: {}]  }
   0x1   :  { %v82_v0 = vld [vmem:[%s146_s0 + $0x1c] sm:$0xf]  ;;  %v83_v1 = vld [vmem:[%s146_s0 + $0x18] sm:$0xf]  ;;  %v84_v2 = vld [vmem:[%s146_s0 + $0x14] sm:$0xf] }
   0x2   :  { %8 = vst [vmem:[#allocation0 + $0x38] sm:$0xf] %v82_v0  ;;  %13 = vst [vmem:[#allocation0 + $0x30] sm:$0xf] %v83_v1  ;;  %v85_v3 = vld [vmem:[%s146_s0 + $0x10] sm:$0xf] }
   0x3   :  { %18 = vst [vmem:[#allocation0 + $0x28] sm:$0xf] %v84_v2  ;;  %v86_v4 = vld [vmem:[%s146_s0 + $0xc] sm:$0xf]  ;;  %v87_v5 = vld [vmem:[%s146_s0 + $0x8] sm:$0xf] }
   0x4   :  { %23 = vst [vmem:[#allocation0 + $0x20] sm:$0xf] %v85_v3  ;;  %28 = vst [vmem:[#allocation0 + $0x18] sm:$0xf] %v86_v4  ;;  %v88_v6 = vld [vmem:[%s146_s0 + $0x4] sm:$0xf] }
   0x5   :  { %33 = vst [vmem:[#allocation0 + $0x10] sm:$0xf] %v87_v5  ;;  %v38_v7 = vld [vmem:[%s146_s0] sm:$0xf]  ;;  %37 = vst [vmem:[#allocation0 + $0x8] sm:$0xf] %v88_v6 }
   0x6   :  { %39 = vst [vmem:[#allocation0] sm:$0xf] %v38_v7  ;;  %s92_s0 = smov 48   ;;  %vm74_vm4 = vcmask 261248  }
   0xb   :  { %v49_v8 = vld [vmem:[#allocation0 + $0x3] ss:$8 sm:$0xf0]   ;;  %v59_v9 = vld [vmem:[#allocation0 + $0x2] ss:$8 sm:$0xf0]  }
   0xc   :  { %v69_v14 = vld [vmem:[#allocation0 + $0x1] ss:$8 sm:$0xf0]   ;;  %v41_v17 = vld [vmem:[#allocation0] ss:$8 sm:$0xf0]  }
   0xd   :  { %v47_v10 = vld [vmem:[#allocation0 + $0x3] ss:$8 sm:$0xf]   ;;  %v57_v11 = vld [vmem:[#allocation0 + $0x2] ss:$8 sm:$0xf]  }
   0xe   :  { %v51_v12 = vsel %vm42_vm0, %v49_v8, %v47_v10  ;;  %v67_v13 = vld [vmem:[#allocation0 + $0x1] ss:$8 sm:$0xf]   ;;  %v40_v16 = vld [vmem:[#allocation0] ss:$8 sm:$0xf]   ;;  %v61_v18 = vsel %vm42_vm0, %v59_v9, %v57_v11 }
   0xf   :  { %52 = vrot.lane.b32.xlu0 %v51_v12, %s92_s0  ;;  %v71_v15 = vsel %vm42_vm0, %v69_v14, %v67_v13  ;;  %v43_v19 = vsel %vm42_vm0, %v41_v17, %v40_v16 }
  0x10   :  { %72 = vrot.lane.b32.xlu1 %v71_v15, %s93_s22  ;;  %45 = vst.msk [vmem:[%s147_s1] sm:$0xff] %vm44_vm1, %v43_v19  }
  0x13   :  { %62 = vrot.lane.b32.xlu0 %v61_v18, %s94_s25 }
  0x81   :  { %v53_v20 = vpop.permute.xlu0 %52  }
  0x82   :  { %55 = vst.msk [vmem:[%s147_s1] sm:$0xff] %vm54_vm2, %v53_v20   ;;  %v73_v21 = vpop.permute.xlu1 %72  }
  0x85   :  { %v63_v22 = vpop.permute.xlu0 %62  }
  0x86   :  { %65 = vst.msk [vmem:[%s147_s1] sm:$0xff] %vm64_vm3, %v63_v22  }
  0x87   :  { %75 = vst.msk [vmem:[%s147_s1] sm:$0xff] %vm74_vm4, %v73_v21  }

// kernel: hrom_attention_pallas.1
= control target key start
LH: loop header
LB: loop body
LE: loop exit
PB: predicated region body
PF: predicated region fallthrough
CT: control target
= control target key end

     0   :  { %v1671_v1 = vmov 0.0   ;;  %vm1672_vm0 = vmmov 0   ;;  %v1673_v5 = vmov 0   ;;  %s1674_s27 = smov 64   ;;  %s1959_s0 = inlined_call_operand.vmem [shape: bf16[16,64], index: 0, kind: input, shape index: {}]   ;;  %s1960_s1 = inlined_call_operand.vmem [shape: bf16[64,320], index: 1, kind: input, shape index: {}]   ;;  %s1961_s2 = inlined_call_operand.vmem [shape: f32[1,320], index: 2, kind: input, shape index: {}]   ;;  %s1962_s3 = inlined_call_operand.vmem [shape: bf16[64,64], index: 3, kind: input, shape index: {}]   ;;  %s1963_s4 = inlined_call_operand.vmem [shape: f32[1,64], index: 4, kind: input, shape index: {}]   ;;  %s1964_s5 = inlined_call_operand.vmem [shape: f32[8,64], index: 5, kind: input, shape index: {}]   ;;  %s1965_s6 = inlined_call_operand.vmem [shape: f32[8,64], index: 6, kind: input, shape index: {}]   ;;  %s1966_s7 = inlined_call_operand.hbm [shape: f32[16,64], index: 7, kind: output, shape index: {}]  }
   0x1   :  { %v1622_v0 = vld [vmem:[%s1960_s1 + $0x4] ss:$12 sps:$4 sm:$0xff]   ;;  %1467 = vmatprep.subr.bf16.mxu1 %v1671_v1  ;;  %v1624_v2 = vld [vmem:[%s1960_s1 + $0x8] ss:$12 sps:$4 sm:$0xff]   ;;  %1475 = vmatprep.mubr.msk.bf16.mxu1 %vm1672_vm0, %v1671_v1  ;;  %v1625_v3 = vld [vmem:[%s1960_s1] ss:$12 sps:$4 sm:$0xff]  }
   0x2   :  { %136 = vmatprep.subr.bf16.mxu0 %v1622_v0  ;;  %1468 = vmatpush3.bf16.msra.mxu1 %v1624_v2  ;;  %v1626_v4 = vld [vmem:[%s1960_s1 + $0x1c] ss:$12 sps:$4 sm:$0xff]   ;;  %v1628_v6 = vld [vmem:[%s1960_s1 + $0x20] ss:$12 sps:$4 sm:$0xff]   ;;  %v1629_v7 = vld [vmem:[%s1960_s1 + $0x18] ss:$12 sps:$4 sm:$0xff]  }
   0x3   :  { %168 = vmatprep.mubr.bf16.mxu0 %v1673_v5  ;;  %137 = vmatpush1.bf16.msra.mxu0 %v1625_v3  ;;  %v1630_v8 = vld [vmem:[%s1960_s1 + $0x34] ss:$12 sps:$4 sm:$0xff]   ;;  %v1632_v9 = vld [vmem:[%s1960_s1 + $0x38] ss:$12 sps:$4 sm:$0xff]   ;;  %v1633_v10 = vld [vmem:[%s1960_s1 + $0x30] ss:$12 sps:$4 sm:$0xff]  }
   0x4   :  { %1469 = vmatprep.subr.bf16.mxu1 %v1671_v1  ;;  %138 = vmatprep.subr.bf16.mxu0 %v1626_v4  ;;  %v1634_v11 = vld [vmem:[%s1960_s1 + $0x4c] ss:$12 sps:$4 sm:$0xff]   ;;  %v1636_v12 = vld [vmem:[%s1960_s1 + $0x50] ss:$12 sps:$4 sm:$0xff]   ;;  %v1637_v13 = vld [vmem:[%s1960_s1 + $0x48] ss:$12 sps:$4 sm:$0xff]  }
   0x5   :  { %v221_v14 = vld [vmem:[%s1965_s6] sm:$0xff] }
   0x6   :  { %1470 = vmatpush3.bf16.msra.mxu1 %v1628_v6  ;;  %225 = vrot.lane.b32.xlu0 %v221_v14, %s1674_s27  ;;  %v220_v15 = vld [vmem:[%s1964_s5] sm:$0xff] }
   0x7   :  { %139 = vmatpush1.bf16.msra.mxu0 %v1629_v7  ;;  %1471 = vmatprep.subr.bf16.mxu1 %v1671_v1  ;;  %v1638_v16 = vld [vmem:[%s1959_s0] sm:$0xff]  }
   0x8   :  { %140 = vmatprep.subr.bf16.mxu0 %v1630_v8 }
   0xa   :  { %1472 = vmatpush3.bf16.msra.mxu1 %v1632_v9 }
   0xb   :  { %141 = vmatpush1.bf16.msra.mxu0 %v1633_v10  ;;  %1473 = vmatprep.subr.bf16.mxu1 %v1671_v1 }
   0xc   :  { %142 = vmatprep.subr.bf16.mxu0 %v1634_v11 }
   0xd   :  { %12 = vsyncpa [#allocation3], 0  ;;  %vm132_vm1 = vcmask 523264   ;;  %242 = vrot.lane.b32.xlu0 %v220_v15, %s1674_s27  ;;  %v48_v17 = vlaneseq  ;;  %v46_v20 = vld [vmem:[%s1961_s2] sm:$0x7]  ;;  %vm264_vm2 = vcmask 130048  }
   0xe   :  { %1474 = vmatpush3.bf16.msra.mxu1 %v1636_v12  ;;  %s1675_s2 = smov 112   ;;  %s1676_s5 = smov 48   ;;  %vm742_vm3 = vcmask 1043456   ;;  %vm690_vm4 = vcmask 64512   ;;  %vm693_vm5 = vcmask 195584   ;;  %vm695_vm6 = vcmask 261120  }
   0xf   :  { %143 = vmatpush1.bf16.msra.mxu0 %v1637_v13  ;;  %1479 = vmatprep.subr.bf16.mxu1 %v1671_v1  ;;  %v49_v18 = vshrl.u32 %v48_v17, 7  ;;  %s1677_s6 = smov 96   ;;  %s1678_s9 = smov 32   ;;  %vm697_vm7 = vcmask 326656   ;;  %vm699_vm8 = vcmask 392192   ;;  %vm701_vm9 = vcmask 457728  }
  0x10   :  { %1491 = vmatprep.subr.bf16.mxu0 %v1671_v1  ;;  %s1679_s10 = smov 80   ;;  %s1680_s11 = smov 16  }
  0x11   :  { %1476 = vmatmul.mubr.msk.bf16.vlgmr.msra.gmra.mrb[0].mxu1 %vm132_vm1, %v1638_v16  ;;  %v58_v19 = vsub.s32 2, %v49_v18  ;;  %v54_v21 = vsub.s32 1, %v49_v18  ;;  %v50_v42 = vsub.s32 0, %v49_v18  ;;  %s1681_s12 = smov 8   ;;  %s1682_s13 = smov 24  }
  0x12   :  { %1401 = vmatmul.mubr.msk.bf16.vlgmr.msra.gmra.mrb[0].mxu0 %vm132_vm1, %v1638_v16  ;;  %1481 = vmatprep.mubr.msk.bf16.mxu1 %vm1672_vm0, %v1671_v1  ;;  %s1683_s14 = smov 40   ;;  %s1684_s15 = smov 56  }
  0x13   :  { %1493 = vmatprep.mubr.msk.bf16.mxu0 %vm1672_vm0, %v1671_v1  ;;  %v59_v22 = vrot.slane %v46_v20, %v58_v19  ;;  %v55_v23 = vrot.slane %v46_v20, %v54_v21  ;;  %v51_v43 = vrot.slane %v46_v20, %v50_v42  ;;  %s1685_s16 = smov 120   ;;  %s1686_s17 = smov 104  }
  0x14   :  { %s1687_s18 = smov 88   ;;  %s1688_s19 = smov 72  }
  0x15   :  { %s1689_s29 = smov [#allocation2]  }
  0x16   :  { %s1377_s30 = sshll.u32 %s1689_s29, 4  ;;  %s1378_s30 = int_to_ptr.vmem [resolvable:$true] %s1377_s30 }
  0x17   :  { %s1647_s8 = scalar_lea.vmem %s1378_s30, 256  ;;  %p1652_p1 = scmp.lt.s32.totalorder %s1378_s30, %s1378_s30 }
  0x18   :  { %p1648_p0 = scmp.ne.s32.totalorder %s1378_s30, %s1647_s8  ;;  %p1653_p2 = scmp.lt.s32.totalorder %s1647_s8, %s1647_s8 }
  0x1a   :  { %p1654_p3 = por %p1653_p2, %p1652_p1 }
  0x1c   :  { %p1655_p4 = pnand %p1654_p3, %p1648_p0 }
  0x78   :  { %v226_v34 = vpop.permute.xlu0 %225 }
  0x7f   :  { %v243_v47 = vpop.permute.xlu0 %242 }
  0xe4   :  { %v213_v24 = vpop.f32.mrb[0].mxu1 }
  0xe5   :  { %v214_v25 = vadd.f32 %v213_v24, %v59_v22  ;;  %v170_v26 = vpop.f32.mrb[0].mxu0  ;;  %v1477_v27 = vpop.f32.mrb[1].mxu1 }
  0xe6   :  { %v172_v28 = vpop.f32.mrb[1].mxu0  ;;  %v216_v29 = vpop.f32.mrb[2].mxu1  ;;  %v171_v44 = vadd.f32 %v170_v26, %v51_v43 }
  0xe7   :  { %v247_v30 = vmul.f32 %v221_v14, %v214_v25  ;;  %v173_v31 = vadd.f32 %v172_v28, %v55_v23  ;;  %v174_v32 = vpop.f32.mrb[2].mxu0  ;;  %v1478_v33 = vpop.f32.mrb[3].mxu1  ;;  %v217_v40 = vadd.f32 %v216_v29, %v59_v22 }
  0xe8   :  { %v176_v35 = vpop.f32.mrb[3].mxu0  ;;  %v175_v45 = vadd.f32 %v174_v32, %v51_v43  ;;  %v222_v48 = vmul.f32 %v220_v15, %v171_v44  ;;  %v245_v54 = vmul.f32 %v243_v47, %v171_v44 }
  0xe9   :  { %v177_v36 = vadd.f32 %v176_v35, %v55_v23  ;;  %251 = vrot.lane.b32.xlu0 %v247_v30, %s1674_s27  ;;  %v228_v37 = vmul.f32 %v226_v34, %v173_v31  ;;  %v248_v41 = vmul.f32 %v221_v14, %v217_v40 }
  0xea   :  { %v223_v49 = vmul.f32 %v220_v15, %v175_v45  ;;  %v246_v56 = vmul.f32 %v243_v47, %v175_v45 }
  0xeb   :  { %v1796_v38 = vpack.c.bf16 %v177_v36, %v173_v31  ;;  %232 = vrot.lane.b32.xlu1 %v228_v37, %s1674_s27  ;;  %v229_v39 = vmul.f32 %v226_v34, %v177_v36 }
  0xed   :  { %v744_v21 = vsel %vm742_vm3, %v1796_v38, 0 }
  0xef   :  { %234 = vrot.lane.b32.xlu1 %v229_v39, %s1674_s27 }
  0xf3   :  { %253 = vrot.lane.b32.xlu1 %v248_v41, %s1674_s27 }
 0x15b   :  { %v252_v53 = vpop.permute.xlu0 %251 }
 0x15c   :  { %v257_v58 = vadd.f32 %v252_v53, %v245_v54 }
 0x15d   :  { %v233_v46 = vpop.permute.xlu1 %232 }
 0x15e   :  { %v238_v51 = vadd.f32 %v233_v46, %v222_v48 }
 0x161   :  { %v235_v50 = vpop.permute.xlu1 %234 }
 0x162   :  { %v239_v52 = vadd.f32 %v235_v50, %v223_v49 }
 0x164   :  { %v240_v55 = vpack.c.bf16 %v239_v52, %v238_v51 }
 0x165   :  { %v254_v57 = vpop.permute.xlu1 %253 }
 0x166   :  { %v258_v59 = vadd.f32 %v254_v57, %v246_v56  ;;  %314 = vrot.lane.b32.xlu1 %v240_v55, %s1675_s2  ;;  %v269_v60 = vsel %vm264_vm2, %v240_v55, 0  ;;  %v465_v62 = vrot.slane %v240_v55, 4 }
 0x167   :  { %1480 = vmatpush3.bf16.xpose.msra.mxu1 %v269_v60 }
 0x168   :  { %v259_v61 = vpack.c.bf16 %v258_v59, %v257_v58  ;;  %1485 = vmatprep.subr.bf16.mxu1 %v1671_v1  ;;  %v470_v12 = vsel %vm264_vm2, %v465_v62, 0 }
 0x16a   :  { %262 = vrot.lane.b32.xlu0 %v259_v61, %s1674_s27  ;;  %311 = vrot.lane.b32.xlu1 %v259_v61, %s1676_s5  ;;  %v462_v63 = vrot.slane %v259_v61, 4 }
 0x16e   :  { %364 = vrot.lane.b32.xlu0 %v240_v55, %s1677_s6  ;;  %362 = vrot.lane.b32.xlu1 %v259_v61, %s1678_s9 }
 0x172   :  { %414 = vrot.lane.b32.xlu0 %v240_v55, %s1679_s10  ;;  %514 = vrot.lane.b32.xlu1 %v465_v62, %s1675_s2 }
 0x176   :  { %412 = vrot.lane.b32.xlu0 %v259_v61, %s1680_s11  ;;  %564 = vrot.lane.b32.xlu1 %v465_v62, %s1677_s6 }
 0x17a   :  { %463 = vrot.lane.b32.xlu0 %v462_v63, %s1674_s27  ;;  %614 = vrot.lane.b32.xlu1 %v465_v62, %s1679_s10 }
 0x17e   :  { %512 = vrot.lane.b32.xlu0 %v462_v63, %s1676_s5  ;;  %612 = vrot.lane.b32.xlu1 %v462_v63, %s1680_s11 }
 0x182   :  { %562 = vrot.lane.b32.xlu0 %v462_v63, %s1678_s9 }
 0x1d8   :  { %v315_v0 = vpop.permute.xlu1 %314 }
 0x1d9   :  { %v320_v4 = vsel %vm264_vm2, %v315_v0, 0 }
 0x1dc   :  { %v263_v2 = vpop.permute.xlu0 %262  ;;  %v312_v3 = vpop.permute.xlu1 %311 }
 0x1dd   :  { %1482 = vmatmul.mubr.msk.bf16.vlgmr.msra.gmra.mrb[4].mxu1 %vm264_vm2, %v263_v2 }
 0x1de   :  { %1486 = vmatpush3.bf16.xpose.msra.mxu1 %v320_v4  ;;  %1487 = vmatprep.mubr.msk.bf16.mxu1 %vm1672_vm0, %v1671_v1 }
 0x1df   :  { %1497 = vmatprep.subr.bf16.mxu1 %v1671_v1 }
 0x1e0   :  { %v365_v5 = vpop.permute.xlu0 %364  ;;  %v363_v6 = vpop.permute.xlu1 %362 }
 0x1e1   :  { %v370_v7 = vsel %vm264_vm2, %v365_v5, 0 }
 0x1e2   :  { %1492 = vmatpush3.bf16.xpose.msra.mxu0 %v370_v7 }
 0x1e3   :  { %1503 = vmatprep.subr.bf16.mxu0 %v1671_v1 }
 0x1e4   :  { %v415_v8 = vpop.permute.xlu0 %414  ;;  %v515_v10 = vpop.permute.xlu1 %514 }
 0x1e5   :  { %v420_v9 = vsel %vm264_vm2, %v415_v8, 0  ;;  %1488 = vmatmul.mubr.msk.bf16.vlgmr.msra.gmra.mrb[8].mxu1 %vm264_vm2, %v312_v3  ;;  %v520_v15 = vsel %vm264_vm2, %v515_v10, 0 }
 0x1e6   :  { %1498 = vmatpush3.bf16.xpose.msra.mxu1 %v420_v9  ;;  %1499 = vmatprep.mubr.msk.bf16.mxu1 %vm1672_vm0, %v1671_v1 }
 0x1e7   :  { %1509 = vmatprep.subr.bf16.mxu1 %v1671_v1 }
 0x1e8   :  { %v413_v11 = vpop.permute.xlu0 %412  ;;  %v565_v13 = vpop.permute.xlu1 %564 }
 0x1e9   :  { %1494 = vmatmul.mubr.msk.bf16.vlgmr.msra.gmra.mrb[4].mxu0 %vm264_vm2, %v363_v6  ;;  %v570_v16 = vsel %vm264_vm2, %v565_v13, 0 }
 0x1ea   :  { %1504 = vmatpush3.bf16.xpose.msra.mxu0 %v470_v12  ;;  %1505 = vmatprep.mubr.msk.bf16.mxu0 %vm1672_vm0, %v1671_v1 }
 0x1eb   :  { %1515 = vmatprep.subr.bf16.mxu0 %v1671_v1 }
 0x1ec   :  { %v464_v14 = vpop.permute.xlu0 %463  ;;  %v615_v17 = vpop.permute.xlu1 %614 }
 0x1ed   :  { %1500 = vmatmul.mubr.msk.bf16.vlgmr.msra.gmra.mrb[12].mxu1 %vm264_vm2, %v413_v11  ;;  %v620_v19 = vsel %vm264_vm2, %v615_v17, 0 }
 0x1ee   :  { %1510 = vmatpush3.bf16.xpose.msra.mxu1 %v520_v15  ;;  %1511 = vmatprep.mubr.msk.bf16.mxu1 %vm1672_vm0, %v1671_v1 }
 0x1ef   :  { %1521 = vmatprep.subr.bf16.mxu1 %v1671_v1 }
 0x1f0   :  { %v513_v18 = vpop.permute.xlu0 %512  ;;  %v613_v22 = vpop.permute.xlu1 %612 }
 0x1f1   :  { %1506 = vmatmul.mubr.msk.bf16.vlgmr.msra.gmra.mrb[8].mxu0 %vm264_vm2, %v464_v14 }
 0x1f2   :  { %1516 = vmatpush3.bf16.xpose.msra.mxu0 %v570_v16  ;;  %1517 = vmatprep.mubr.msk.bf16.mxu0 %vm1672_vm0, %v1671_v1 }
 0x1f3   :  { %1527 = vmatprep.subr.bf16.mxu0 %v1671_v1 }
 0x1f4   :  { %v563_v20 = vpop.permute.xlu0 %562 }
 0x1f5   :  { %1512 = vmatmul.mubr.msk.bf16.vlgmr.msra.gmra.mrb[16].mxu1 %vm264_vm2, %v513_v18 }
 0x1f6   :  { %1522 = vmatpush3.bf16.xpose.msra.mxu1 %v620_v19  ;;  %1523 = vmatprep.mubr.msk.bf16.mxu1 %vm1672_vm0, %v1671_v1 }
 0x1f7   :  { %1533 = vmatprep.subr.bf16.mxu1 %v1671_v1 }
 0x1f9   :  { %1518 = vmatmul.mubr.msk.bf16.vlgmr.msra.gmra.mrb[12].mxu0 %vm264_vm2, %v563_v20 }
 0x1fa   :  { %1528 = vmatpush3.bf16.msra.mxu0 %v744_v21  ;;  %1529 = vmatprep.mubr.msk.bf16.mxu0 %vm1672_vm0, %v1671_v1 }
 0x1fb   :  { %1539 = vmatprep.subr.bf16.mxu0 %v1671_v1 }
 0x1fd   :  { %1524 = vmatmul.mubr.msk.bf16.vlgmr.msra.gmra.mrb[20].mxu1 %vm264_vm2, %v613_v22 }
 0x1fe   :  { %1535 = vmatprep.mubr.msk.bf16.mxu1 %vm1672_vm0, %v1671_v1 }
 0x2b0   :  { %v305_v23 = vpop.f32.mrb[4].mxu1 }
 0x2b1   :  { %v1483_v24 = vpop.f32.mrb[5].mxu1 }
 0x2b2   :  { %v308_v25 = vpop.f32.mrb[6].mxu1 }
 0x2b3   :  { %v1484_v26 = vpop.f32.mrb[7].mxu1 }
 0x2b8   :  { %v356_v27 = vpop.f32.mrb[8].mxu1 }
 0x2b9   :  { %663 = vrot.lane.b32.xlu0 %v356_v27, %s1681_s12  ;;  %v1489_v28 = vpop.f32.mrb[9].mxu1 }
 0x2ba   :  { %v359_v29 = vpop.f32.mrb[10].mxu1 }
 0x2bb   :  { %v1490_v30 = vpop.f32.mrb[11].mxu1  ;;  %v1023_v29 = vrot.slane %v1796_v38, 4 }
 0x2bc   :  { %v406_v31 = vpop.f32.mrb[4].mxu0 }
 0x2bd   :  { %v1495_v32 = vpop.f32.mrb[5].mxu0  ;;  %667 = vrot.lane.b32.xlu1 %v406_v31, %s1680_s11 }
 0x2be   :  { %v409_v33 = vpop.f32.mrb[6].mxu0 }
 0x2bf   :  { %v1496_v34 = vpop.f32.mrb[7].mxu0 }
 0x2c0   :  { %v456_v35 = vpop.f32.mrb[12].mxu1 }
 0x2c1   :  { %671 = vrot.lane.b32.xlu0 %v456_v35, %s1682_s13  ;;  %v1501_v36 = vpop.f32.mrb[13].mxu1 }
 0x2c2   :  { %v459_v37 = vpop.f32.mrb[14].mxu1 }
 0x2c3   :  { %v1502_v39 = vpop.f32.mrb[15].mxu1 }
 0x2c4   :  { %v506_v40 = vpop.f32.mrb[8].mxu0 }
 0x2c5   :  { %675 = vrot.lane.b32.xlu1 %v506_v40, %s1678_s9  ;;  %v1507_v41 = vpop.f32.mrb[9].mxu0 }
 0x2c6   :  { %v509_v42 = vpop.f32.mrb[10].mxu0 }
 0x2c7   :  { %v1508_v43 = vpop.f32.mrb[11].mxu0 }
 0x2c8   :  { %v556_v44 = vpop.f32.mrb[16].mxu1 }
 0x2c9   :  { %679 = vrot.lane.b32.xlu0 %v556_v44, %s1683_s14  ;;  %v1513_v45 = vpop.f32.mrb[17].mxu1 }
 0x2ca   :  { %v559_v46 = vpop.f32.mrb[18].mxu1 }
 0x2cb   :  { %v1514_v47 = vpop.f32.mrb[19].mxu1 }
 0x2cc   :  { %v606_v48 = vpop.f32.mrb[12].mxu0  ;;  %v1028_v47 = vsel %vm742_vm3, %v1023_v29, 0 }
 0x2cd   :  { %683 = vrot.lane.b32.xlu1 %v606_v48, %s1676_s5  ;;  %v1519_v49 = vpop.f32.mrb[13].mxu0 }
 0x2ce   :  { %v609_v50 = vpop.f32.mrb[14].mxu0 }
 0x2cf   :  { %v1520_v51 = vpop.f32.mrb[15].mxu0 }
 0x2d0   :  { %v656_v52 = vpop.f32.mrb[20].mxu1 }
 0x2d1   :  { %687 = vrot.lane.b32.xlu0 %v656_v52, %s1684_s15  ;;  %v1525_v53 = vpop.f32.mrb[21].mxu1 }
 0x2d2   :  { %v659_v54 = vpop.f32.mrb[22].mxu1 }
 0x2d3   :  { %v1526_v55 = vpop.f32.mrb[23].mxu1 }
 0x2d5   :  { %807 = vrot.lane.b32.xlu0 %v1796_v38, %s1675_s2 }
 0x2d9   :  { %941 = vrot.lane.b32.xlu0 %v1796_v38, %s1679_s10 }
 0x32b   :  { %v664_v56 = vpop.permute.xlu0 %663 }
 0x32c   :  { %v691_v60 = vsel %vm690_vm4, %v305_v23, %v664_v56  ;;  %v1639_v56 = vld [vmem:[%s1962_s3] sm:$0xff]  }
 0x32f   :  { %v668_v57 = vpop.permute.xlu1 %667 }
 0x330   :  { %v692_v61 = vsel %vm264_vm2, %v691_v60, %v668_v57 }
 0x333   :  { %v672_v58 = vpop.permute.xlu0 %671 }
 0x334   :  { %v694_v63 = vsel %vm693_vm5, %v692_v61, %v672_v58 }
 0x337   :  { %v676_v59 = vpop.permute.xlu1 %675 }
 0x338   :  { %v696_v2 = vsel %vm695_vm6, %v694_v63, %v676_v59 }
 0x33b   :  { %v680_v62 = vpop.permute.xlu0 %679 }
 0x33c   :  { %v698_v3 = vsel %vm697_vm7, %v696_v2, %v680_v62 }
 0x33f   :  { %v684_v0 = vpop.permute.xlu1 %683 }
 0x340   :  { %v700_v4 = vsel %vm699_vm8, %v698_v3, %v684_v0 }
 0x343   :  { %v688_v5 = vpop.permute.xlu0 %687 }
 0x344   :  { %v702_v6 = vsel %vm701_vm9, %v700_v4, %v688_v5 }
 0x345   :  { %v703_v7 = vsel %vm132_vm1, %v702_v6, -inf }
 0x346   :  { %v704_v8 = vrot.slane %v703_v7, 4 }
 0x347   :  { %v808_v9 = vpop.permute.xlu0 %807 }
 0x348   :  { %v705_v10 = vmax.f32 %v703_v7, %v704_v8  ;;  %v813_v11 = vsel %vm742_vm3, %v808_v9, 0 }
 0x349   :  { %1534 = vmatpush3.bf16.msra.mxu1 %v813_v11  ;;  %v1641_v11 = vld [vmem:[%s1962_s3 + $0x10] sm:$0xff]  }
 0x34a   :  { %v706_v12 = vrot.slane %v705_v10, 2  ;;  %1545 = vmatprep.subr.bf16.mxu1 %v1671_v1 }
 0x34b   :  { %v942_v30 = vpop.permute.xlu0 %941 }
 0x34c   :  { %v707_v13 = vmax.f32 %v705_v10, %v706_v12  ;;  %v947_v46 = vsel %vm742_vm3, %v942_v30, 0 }
 0x34e   :  { %v708_v14 = vrot.slane %v707_v13, 1 }
 0x350   :  { %v709_v15 = vmax.f32 %v707_v13, %v708_v14 }
 0x352   :  { %v710_v16 = vsub.f32 %v702_v6, %v709_v15  ;;  %v1640_v6 = vld [vmem:[%s1962_s3 + $0x8] sm:$0xff]  }
 0x354   :  { %v711_v17 = vmul.f32 1.442695, %v710_v16  ;;  %v1642_v16 = vld [vmem:[%s1962_s3 + $0x18] sm:$0xff]  }
 0x356   :  { %1643 = vpow2.f32 %v711_v17 }
 0x360   :  { %v1644_v18 = vpop.eup %1643 }
 0x361   :  { %v713_v19 = vsel %vm132_vm1, %v1644_v18, 0.0 }
 0x362   :  { %v714_v20 = vrot.slane %v713_v19, 4 }
 0x364   :  { %v715_v21 = vadd.f32 %v714_v20, %v713_v19 }
 0x366   :  { %v716_v22 = vrot.slane %v715_v21, 2 }
 0x368   :  { %v717_v23 = vadd.f32 %v716_v22, %v715_v21 }
 0x36a   :  { %v718_v24 = vrot.slane %v717_v23, 1 }
 0x36c   :  { %v719_v25 = vadd.f32 %v718_v24, %v717_v23 }
 0x36e   :  { %1645 = vrcp.f32 %v719_v25 }
 0x378   :  { %v1646_v26 = vpop.eup %1645 }
 0x379   :  { %v721_v27 = vmul.f32 %v1646_v26, %v1644_v18 }
 0x37b   :  { %v722_v28 = vpack.c.bf16 %v721_v27, %v721_v27 }
 0x37d   :  { %855 = vrot.lane.b32.xlu0 %v722_v28, %s1675_s2  ;;  %787 = vrot.lane.b32.xlu1 %v722_v28, %s1685_s16 }
 0x381   :  { %1004 = vrot.lane.b32.xlu0 %v722_v28, %s1677_s6  ;;  %874 = vrot.lane.b32.xlu1 %v1796_v38, %s1677_s6 }
 0x385   :  { %1137 = vrot.lane.b32.xlu0 %v722_v28, %s1679_s10  ;;  %922 = vrot.lane.b32.xlu1 %v722_v28, %s1686_s17 }
 0x389   :  { %1089 = vrot.lane.b32.xlu1 %v1023_v29, %s1675_s2 }
 0x38d   :  { %1070 = vrot.lane.b32.xlu1 %v722_v28, %s1687_s18 }
 0x391   :  { %1156 = vrot.lane.b32.xlu1 %v1023_v29, %s1677_s6 }
 0x395   :  { %1204 = vrot.lane.b32.xlu1 %v722_v28, %s1688_s19 }
 0x3a3   :  { %723 = vxpose.xlu0.c.b16.start.end [1/1] (short) (narrow) %v722_v28, 16 }
 0x3ac   :  { %1223 = vrot.lane.b32.xlu0 %v1023_v29, %s1679_s10 }
 0x3ef   :  { %v788_v31 = vpop.permute.xlu1 %787  ;;  %v856_v32 = vpop.permute.xlu0 %855 }
 0x3f0   :  { %790 = vxpose.xlu1.c.b16.start.end [1/1] (short) (narrow) %v788_v31, 16  ;;  %858 = vxpose.xlu0.c.b16.start.end [1/1] (short) (narrow) %v856_v32, 16 }
 0x3f3   :  { %v875_v33 = vpop.permute.xlu1 %874  ;;  %v1005_v38 = vpop.permute.xlu0 %1004 }
 0x3f4   :  { %v880_v42 = vsel %vm742_vm3, %v875_v33, 0 }
 0x3f7   :  { %v923_v34 = vpop.permute.xlu1 %922  ;;  %v1138_v37 = vpop.permute.xlu0 %1137 }
 0x3f8   :  { %925 = vxpose.xlu1.c.b16.start.end [1/1] (short) (narrow) %v923_v34, 16 }
 0x3fb   :  { %v1090_v35 = vpop.permute.xlu1 %1089 }
 0x3fc   :  { %1007 = vxpose.xlu1.c.b16.start.end [1/1] (short) (narrow) %v1005_v38, 16  ;;  %v1095_v49 = vsel %vm742_vm3, %v1090_v35, 0 }
 0x3ff   :  { %v1071_v36 = vpop.permute.xlu1 %1070 }
 0x400   :  { %1073 = vxpose.xlu1.c.b16.start.end [1/1] (short) (narrow) %v1071_v36, 16 }
 0x403   :  { %v1157_v39 = vpop.permute.xlu1 %1156 }
 0x404   :  { %1140 = vxpose.xlu1.c.b16.start.end [1/1] (short) (narrow) %v1138_v37, 16  ;;  %v1162_v51 = vsel %vm742_vm3, %v1157_v39, 0 }
 0x407   :  { %v1205_v40 = vpop.permute.xlu1 %1204 }
 0x408   :  { %1207 = vxpose.xlu1.c.b16.start.end [1/1] (short) (narrow) %v1205_v40, 16 }
 0x409   :  { %v731_v41 = vpop.trf.xlu0 }
 0x40a   :  { %1530 = vmatmul.mubr.msk.bf16.vlgmr.msra.gmra.mrb[16].mxu0 %vm690_vm4, %v731_v41 }
 0x40b   :  { %1540 = vmatpush3.bf16.msra.mxu0 %v880_v42  ;;  %1541 = vmatprep.mubr.msk.bf16.mxu0 %vm1672_vm0, %v1671_v1 }
 0x40c   :  { %1551 = vmatprep.subr.bf16.mxu0 %v1671_v1 }
 0x41e   :  { %v1224_v43 = vpop.permute.xlu0 %1223 }
 0x41f   :  { %v1229_v53 = vsel %vm742_vm3, %v1224_v43, 0 }
 0x456   :  { %v798_v44 = vpop.trf.xlu1  ;;  %v866_v45 = vpop.trf.xlu0 }
 0x457   :  { %1536 = vmatmul.mubr.msk.bf16.vlgmr.msra.gmra.mrb[24].mxu1 %vm690_vm4, %v798_v44  ;;  %1542 = vmatmul.mubr.msk.bf16.vlgmr.msra.gmra.mrb[20].mxu0 %vm690_vm4, %v866_v45 }
 0x458   :  { %1546 = vmatpush3.bf16.msra.mxu1 %v947_v46  ;;  %1552 = vmatpush3.bf16.msra.mxu0 %v1028_v47  ;;  %v1419_v47 = vld [vmem:[%s1963_s4] ss:$0 sm:$0xff] }
 0x459   :  { %1547 = vmatprep.mubr.msk.bf16.mxu1 %vm1672_vm0, %v1671_v1  ;;  %1557 = vmatprep.subr.bf16.mxu1 %v1671_v1 }
 0x45a   :  { %1553 = vmatprep.mubr.msk.bf16.mxu0 %vm1672_vm0, %v1671_v1  ;;  %1563 = vmatprep.subr.bf16.mxu0 %v1671_v1 }
 0x45e   :  { %v933_v48 = vpop.trf.xlu1 }
 0x45f   :  { %1548 = vmatmul.mubr.msk.bf16.vlgmr.msra.gmra.mrb[28].mxu1 %vm690_vm4, %v933_v48 }
 0x460   :  { %1558 = vmatpush3.bf16.msra.mxu1 %v1095_v49  ;;  %1559 = vmatprep.mubr.msk.bf16.mxu1 %vm1672_vm0, %v1671_v1 }
 0x461   :  { %1569 = vmatprep.subr.bf16.mxu1 %v1671_v1 }
 0x462   :  { %v1015_v50 = vpop.trf.xlu1 }
 0x463   :  { %1554 = vmatmul.mubr.msk.bf16.vlgmr.msra.gmra.mrb[24].mxu0 %vm690_vm4, %v1015_v50 }
 0x464   :  { %1564 = vmatpush3.bf16.msra.mxu0 %v1162_v51  ;;  %1565 = vmatprep.mubr.msk.bf16.mxu0 %vm1672_vm0, %v1671_v1 }
 0x465   :  { %1575 = vmatprep.subr.bf16.mxu0 %v1671_v1 }
 0x466   :  { %v1081_v52 = vpop.trf.xlu1 }
 0x467   :  { %1560 = vmatmul.mubr.msk.bf16.vlgmr.msra.gmra.mrb[32].mxu1 %vm690_vm4, %v1081_v52 }
 0x468   :  { %1570 = vmatpush3.bf16.msra.mxu1 %v1229_v53  ;;  %1571 = vmatprep.mubr.msk.bf16.mxu1 %vm1672_vm0, %v1671_v1 }
 0x46a   :  { %v1148_v54 = vpop.trf.xlu1 }
 0x46b   :  { %1566 = vmatmul.mubr.msk.bf16.vlgmr.msra.gmra.mrb[28].mxu0 %vm690_vm4, %v1148_v54 }
 0x46c   :  { %1583 = vmatprep.mubr.msk.bf16.mxu0 %vm1672_vm0, %v1671_v1  ;;  %1576 = vmatpush3.bf16.msra.mxu0 %v1639_v56 }
 0x46d   :  { %1577 = vmatprep.subr.bf16.mxu0 %v1671_v1 }
 0x46e   :  { %v1215_v55 = vpop.trf.xlu1 }
 0x46f   :  { %1572 = vmatmul.mubr.msk.bf16.vlgmr.msra.gmra.mrb[36].mxu1 %vm690_vm4, %v1215_v55 }
 0x470   :  { %1578 = vmatpush3.bf16.msra.mxu0 %v1640_v6 }
 0x471   :  { %1579 = vmatprep.subr.bf16.mxu0 %v1671_v1 }
 0x474   :  { %1580 = vmatpush3.bf16.msra.mxu0 %v1641_v11 }
 0x475   :  { %1581 = vmatprep.subr.bf16.mxu0 %v1671_v1 }
 0x478   :  { %1582 = vmatpush3.bf16.msra.mxu0 %v1642_v16 }
 0x4dd   :  { %v780_v57 = vpop.f32.mrb[16].mxu0 }
 0x4de   :  { %v1531_v58 = vpop.f32.mrb[17].mxu0 }
 0x4df   :  { %v783_v59 = vpop.f32.mrb[18].mxu0 }
 0x4e0   :  { %v1532_v60 = vpop.f32.mrb[19].mxu0 }
 0x52a   :  { %v849_v61 = vpop.f32.mrb[24].mxu1  ;;  %v916_v62 = vpop.f32.mrb[20].mxu0 }
 0x52b   :  { %v1537_v63 = vpop.f32.mrb[25].mxu1  ;;  %v1543_v0 = vpop.f32.mrb[21].mxu0 }
 0x52c   :  { %v852_v2 = vpop.f32.mrb[26].mxu1  ;;  %v919_v3 = vpop.f32.mrb[22].mxu0 }
 0x52d   :  { %v1538_v4 = vpop.f32.mrb[27].mxu1  ;;  %v1544_v5 = vpop.f32.mrb[23].mxu0 }
 0x532   :  { %v983_v7 = vpop.f32.mrb[28].mxu1 }
 0x533   :  { %v1549_v8 = vpop.f32.mrb[29].mxu1 }
 0x534   :  { %v986_v9 = vpop.f32.mrb[30].mxu1 }
 0x535   :  { %v1550_v10 = vpop.f32.mrb[31].mxu1 }
 0x536   :  { %v1064_v12 = vpop.f32.mrb[24].mxu0 }
 0x537   :  { %v1555_v13 = vpop.f32.mrb[25].mxu0 }
 0x538   :  { %v1067_v14 = vpop.f32.mrb[26].mxu0 }
 0x539   :  { %v1556_v15 = vpop.f32.mrb[27].mxu0 }
 0x53a   :  { %v1131_v17 = vpop.f32.mrb[32].mxu1 }
 0x53b   :  { %v1607_v18 = vpack.i.bf16 %v1131_v17, %v849_v61  ;;  %v1561_v19 = vpop.f32.mrb[33].mxu1 }
 0x53c   :  { %v1134_v20 = vpop.f32.mrb[34].mxu1 }
 0x53d   :  { %1608 = vrot.lane.b32.xlu1 %v1607_v18, %s1680_s11  ;;  %v1562_v21 = vpop.f32.mrb[35].mxu1 }
 0x53e   :  { %v1198_v22 = vpop.f32.mrb[28].mxu0 }
 0x53f   :  { %v1612_v23 = vpack.i.bf16 %v1198_v22, %v916_v62  ;;  %v1567_v24 = vpop.f32.mrb[29].mxu0 }
 0x540   :  { %v1201_v25 = vpop.f32.mrb[30].mxu0 }
 0x541   :  { %v1568_v26 = vpop.f32.mrb[31].mxu0  ;;  %1613 = vrot.lane.b32.xlu1 %v1612_v23, %s1678_s9 }
 0x542   :  { %v1265_v1 = vpop.f32.mrb[36].mxu1 }
 0x543   :  { %v1617_v27 = vpack.i.bf16 %v1265_v1, %v983_v7  ;;  %v1573_v28 = vpop.f32.mrb[37].mxu1 }
 0x544   :  { %v1268_v29 = vpop.f32.mrb[38].mxu1 }
 0x545   :  { %1618 = vrot.lane.b32.xlu1 %v1617_v27, %s1676_s5  ;;  %v1574_v30 = vpop.f32.mrb[39].mxu1 }
 0x5af   :  { %v1609_v31 = vpop.permute.xlu1 %1608 }
 0x5b0   :  { %v1611_v33 = vunpack.i.h.bf16 %v1609_v31  ;;  %v1610_v34 = vunpack.i.l.bf16 %v1609_v31 }
 0x5b2   :  { %v1283_v37 = vsel %vm264_vm2, %v1064_v12, %v1611_v33  ;;  %v1001_v39 = vsel %vm264_vm2, %v780_v57, %v1610_v34 }
 0x5b3   :  { %v1614_v32 = vpop.permute.xlu1 %1613 }
 0x5b4   :  { %v1616_v38 = vunpack.i.h.bf16 %v1614_v32  ;;  %v1615_v35 = vunpack.i.l.bf16 %v1614_v32 }
 0x5b6   :  { %v1002_v42 = vsel %vm695_vm6, %v1001_v39, %v1615_v35  ;;  %v1284_v43 = vsel %vm695_vm6, %v1283_v37, %v1616_v38 }
 0x5b7   :  { %v1619_v36 = vpop.permute.xlu1 %1618 }
 0x5b8   :  { %v1621_v40 = vunpack.i.h.bf16 %v1619_v36  ;;  %v1620_v41 = vunpack.i.l.bf16 %v1619_v36 }
 0x5ba   :  { %v1285_v44 = vsel %vm699_vm8, %v1284_v43, %v1621_v40  ;;  %v1003_v45 = vsel %vm699_vm8, %v1002_v42, %v1620_v41 }
 0x5bb   :  { %v1286_v46 = vpack.c.bf16 %v1285_v44, %v1003_v45 }
 0x5bd   :  { %1584 = vmatmul.mubr.msk.bf16.vlgmr.msra.gmra.mrb[32].mxu0 %vm132_vm1, %v1286_v46 }
 0x690   :  { %v1363_v48 = vpop.f32.mrb[32].mxu0 }
 0x691   :  { %v1364_v49 = vadd.f32 %v1419_v47, %v1363_v48  ;;  %v1585_v50 = vpop.f32.mrb[33].mxu0 }
 0x692   :  { %v1366_v51 = vpop.f32.mrb[34].mxu0 }
 0x693   :  { %1370 = vst.msk [vmem:[#allocation2] sm:$0xff] %vm132_vm1, %v1364_v49  ;;  %v1367_v52 = vadd.f32 %v1419_v47, %v1366_v51  ;;  %v1586_v53 = vpop.f32.mrb[35].mxu0 }
 0x695   :  { %1371 = vst.msk [vmem:[#allocation2 + $0x8] sm:$0xff] %vm132_vm1, %v1367_v52 }
 0x696   :  { %1658 = shalt.err (!%p1655_p4)
}
 0x697   :  { %s1659_s1 = scalar_lea.hbm %s1966_s7, 256 }
 0x698   :  { %p1660_p5 = scmp.ne.s32.totalorder %s1966_s7, %s1659_s1  ;;  %p1663_p6 = scmp.lt.u32.totalorder %s1659_s1, %s1966_s7 }
 0x69a   :  { %p1665_p7 = pnand %p1663_p6, %p1660_p5 }
 0x69c   :  { %1668 = shalt.err (!%p1665_p7)
}
 0x69d   :  { %s1690_s10 = smov 128  }
 0x69e   :  { %1383 = dma.vmem_to_hbm [thread:$0]  %s1378_s30, 256, %s1966_s7, [#allocation3], %s1690_s10, %s1690_s10, %s1681_s12  }
 0x69f   :  { %1669 = dma.done.wait [#allocation3], 256  }
 0x6a0   :  { %1670 = vsyncadd [#allocation3], 4294967040 }
 0x6a1   :  { %1387 = vsyncpa [#allocation3], 1 }

</bundles_post_ra>
